<compile_context>
chip_gen: v5e
topology: v5e:2x2
jax: 0.10.0
libtpu: 0.0.40
codegen_flags: <defaults>
</compile_context>

<pallas_src>
import jax
import jax.numpy as jnp
from jax.experimental import pallas as pl
from jax.experimental.pallas import tpu as pltpu

HIDDEN1 = 32
HIDDEN2 = 128


def _round_up(n, m):
    return ((n + m - 1) // m) * m


def pinn_kernel(x_ref, w1_ref, b1_ref, w2_ref, b2_ref, w3_ref, b3_ref, o_ref):
    """One (in_dim, TB) batch tile, feature-major.

    x_ref : (in_dim, TB)     f32  streamed (batch on lanes)
    w1    : (H1, in_dim)     f32  resident
    b1    : (H1, 1)          f32  resident
    w2    : (H2, H1)         bf16 resident
    b2    : (H2, 1)          f32  resident
    w3    : (out_dim, H2)    bf16 resident
    b3    : (out_dim, 1)     f32  resident
    o_ref : (out_dim, TB)    f32  lane-dense store (no padding)
    """
    xT = x_ref[...]                       # (in_dim, TB) f32
    w1 = w1_ref[...]                      # (H1, in_dim) f32

    # ---- Layer 1: Linear(in_dim, 32) + tanh, on the VPU ---------------------
    # K = in_dim is tiny; an MXU matmul would burn a full pass for 4 MACs.
    # Unrolled outer-product accumulation: in_dim broadcast FMAs on (H1, TB).
    in_dim = xT.shape[0]
    s = w1[:, 0:1] * xT[0:1, :]           # (H1,1) * (1,TB) -> (H1,TB)
    for k in range(1, in_dim):
        s = s + w1[:, k:k + 1] * xT[k:k + 1, :]
    h1 = jnp.tanh(s + b1_ref[...])        # (H1, TB) f32

    # ---- Layer 2: Linear(32, 128) + tanh, MXU (bf16 operands, f32 acc) ------
    h2 = jnp.dot(w2_ref[...], h1.astype(jnp.bfloat16),
                 preferred_element_type=jnp.float32)
    h2 = jnp.tanh(h2 + b2_ref[...])       # (H2, TB) f32

    # ---- Layer 3: Linear(128, out_dim), MXU (bf16 operands, f32 acc) --------
    out = jnp.dot(w3_ref[...], h2.astype(jnp.bfloat16),
                  preferred_element_type=jnp.float32)
    o_ref[...] = (out + b3_ref[...]).astype(o_ref.dtype)   # (out_dim, TB)


def pinn_forward(x, params, *, tb=2048):
    """x: [B, in_dim] float32. params in PyTorch layout (W:[out,in], b:[out,1]).

    Returns [B, out_dim] float32 (same semantics as the PyTorch forward)."""
    B, in_dim = x.shape
    out_dim = params["w3"].shape[0]

    # Batch tile: multiple of 128 (batch maps to lanes).  Cap at ~ceil(B/2) so
    # there are >= 2 grid steps whenever B > 128 -> both TensorCores get work
    # on dual-TC chips; harmless on single-TC parts.
    tb = max(128, _round_up(tb, 128))
    TB = max(128, min(tb, _round_up(pl.cdiv(B, 2), 128)))
    Bp = pl.cdiv(B, TB) * TB

    # Feature-major input; padded batch columns compute garbage, sliced off below.
    xT = jnp.pad(x.T, ((0, 0), (0, Bp - B)))

    # Weights stay in PyTorch [out, in] layout (feature-major matmuls).  MXU
    # operands are pre-cast to bf16 once; biases / accumulation / tanh stay f32.
    w1 = params["w1"].astype(jnp.float32)
    w2 = params["w2"].astype(jnp.bfloat16)
    w3 = params["w3"].astype(jnp.bfloat16)
    b1 = params["b1"].astype(jnp.float32)
    b2 = params["b2"].astype(jnp.float32)
    b3 = params["b3"].astype(jnp.float32)

    grid = (Bp // TB,)

    param_bytes = int(w1.size * 4 + b1.size * 4 + w2.size * 2 + b2.size * 4
                      + w3.size * 2 + b3.size * 4)
    cost = pl.CostEstimate(
        flops=2 * Bp * (in_dim * HIDDEN1 + HIDDEN1 * HIDDEN2 + HIDDEN2 * out_dim),
        transcendentals=Bp * (HIDDEN1 + HIDDEN2),
        bytes_accessed=Bp * in_dim * 4 + Bp * out_dim * 4 + param_bytes,
    )

    outT = pl.pallas_call(
        pinn_kernel,
        out_shape=jax.ShapeDtypeStruct((out_dim, Bp), jnp.float32),
        grid=grid,
        in_specs=[
            # Streamed batch tile (double-buffered by the Pallas pipeline).
            pl.BlockSpec((in_dim, TB), lambda i: (0, i)),
            # Weights/biases: constant block index -> resident in VMEM, no re-DMA.
            pl.BlockSpec((HIDDEN1, in_dim), lambda i: (0, 0)),
            pl.BlockSpec((HIDDEN1, 1), lambda i: (0, 0)),
            pl.BlockSpec((HIDDEN2, HIDDEN1), lambda i: (0, 0)),
            pl.BlockSpec((HIDDEN2, 1), lambda i: (0, 0)),
            pl.BlockSpec((out_dim, HIDDEN2), lambda i: (0, 0)),
            pl.BlockSpec((out_dim, 1), lambda i: (0, 0)),
        ],
        out_specs=pl.BlockSpec((out_dim, TB), lambda i: (0, i)),
        compiler_params=pltpu.CompilerParams(
            # Batch axis is embarrassingly parallel; shards across TCs on
            # dual-TensorCore chips (v7x).  v5e/v6e are single-TC: no-op there.
            dimension_semantics=("parallel",),
        ),
        cost_estimate=cost,
    )(xT, w1, b1, w2, b2, w3, b3)

    return outT[:, :B].T


def init_params(key, input_dim, output_dim):
    """Deterministic init mimicking PyTorch Linear default U(-1/sqrt(fan_in), +)."""
    ks = jax.random.split(key, 6)

    def lin(kw, kb, fan_in, fan_out):
        bound = 1.0 / jnp.sqrt(jnp.float32(fan_in))
        w = jax.random.uniform(kw, (fan_out, fan_in), jnp.float32, -bound, bound)
        b = jax.random.uniform(kb, (fan_out, 1), jnp.float32, -bound, bound)
        return w, b

    w1, b1 = lin(ks[0], ks[1], input_dim, HIDDEN1)
    w2, b2 = lin(ks[2], ks[3], HIDDEN1, HIDDEN2)
    w3, b3 = lin(ks[4], ks[5], HIDDEN2, output_dim)
    # TODO(synk): mu_max/Km/Y_XS (and t_start/t_end) only enter the physics
    # residual, not forward(); fuse the residual into this kernel (keeping h2
    # on-chip) once its formulation is specified.
    return {"w1": w1, "b1": b1, "w2": w2, "b2": b2, "w3": w3, "b3": b3,
            "mu_max": jnp.array([0.5], jnp.float32),
            "Km": jnp.array([0.5], jnp.float32),
            "Y_XS": jnp.array([0.5], jnp.float32)}


def pinn_ref(x, p, *, mxu_dtype=jnp.float32):
    """Pure-JAX reference (PyTorch semantics).  mxu_dtype=bf16 mirrors the
    kernel's MXU operand precision for a tight numerical check."""
    h1 = jnp.tanh(x @ p["w1"].T + p["b1"].T)
    h2 = jnp.tanh(jnp.dot(h1.astype(mxu_dtype), p["w2"].T.astype(mxu_dtype),
                          preferred_element_type=jnp.float32) + p["b2"].T)
    return jnp.dot(h2.astype(mxu_dtype), p["w3"].T.astype(mxu_dtype),
                   preferred_element_type=jnp.float32) + p["b3"].T


if __name__ == "__main__":
    key = jax.random.PRNGKey(0)
    k_x, k_p = jax.random.split(key)

    B, input_dim, output_dim = 8, 4, 2   # e.g. time + 3 state vars -> 2 outputs
    x = jax.random.uniform(k_x, (B, input_dim), jnp.float32, 0.0, 10.0)
    params = init_params(k_p, input_dim, output_dim)

    out = pinn_forward(x, params)
    jax.block_until_ready(out)
    assert out.shape == (B, output_dim)
    # Tight check vs a reference that mirrors the kernel's bf16-operand MXU math.
    assert jnp.allclose(out, pinn_ref(x, params, mxu_dtype=jnp.bfloat16),
                        atol=5e-3, rtol=5e-3)
    # Looser check vs the pure-f32 PyTorch-equivalent reference (bf16 operands,
    # f32 accumulation => small, bounded deviation).
    assert jnp.allclose(out, pinn_ref(x, params), atol=5e-2, rtol=5e-2)

    # Exercise the multi-step / padded grid path (non-multiple-of-tile batch).
    B2 = 3000
    x2 = jax.random.uniform(k_x, (B2, input_dim), jnp.float32, 0.0, 10.0)
    out2 = pinn_forward(x2, params)
    jax.block_until_ready(out2)
    assert out2.shape == (B2, output_dim)
    assert jnp.allclose(out2, pinn_ref(x2, params, mxu_dtype=jnp.bfloat16),
                        atol=5e-3, rtol=5e-3)
    assert jnp.allclose(out2, pinn_ref(x2, params), atol=5e-2, rtol=5e-2)

    print("KERNEL_OK")
</pallas_src>

<mosaic_0001>
module attributes {stable_mosaic.version = 11 : i64} {
  func.func @pinn_kernel(%arg0: i32, %arg1: memref<4x128xf32, #tpu.memory_space<vmem>>, %arg2: memref<32x4xf32, #tpu.memory_space<vmem>>, %arg3: memref<32x1xf32, #tpu.memory_space<vmem>>, %arg4: memref<128x32xbf16, #tpu.memory_space<vmem>>, %arg5: memref<128x1xf32, #tpu.memory_space<vmem>>, %arg6: memref<2x128xbf16, #tpu.memory_space<vmem>>, %arg7: memref<2x1xf32, #tpu.memory_space<vmem>>, %arg8: memref<2x128xf32, #tpu.memory_space<vmem>>) attributes {dimension_semantics = [#tpu.dimension_semantics<parallel>], iteration_bounds = array<i64: 1>, scalar_prefetch = 0 : i64, scratch_operands = 0 : i64, tpu.core_type = #tpu.core_type<tc>, window_params = [{transform_indices = @transform_0, window_bounds = array<i64: 4, 128>}, {pipeline_mode = #tpu.pipeline_mode<synchronous>, transform_indices = @transform_1, window_bounds = array<i64: 32, 4>}, {pipeline_mode = #tpu.pipeline_mode<synchronous>, transform_indices = @transform_2, window_bounds = array<i64: 32, 1>}, {pipeline_mode = #tpu.pipeline_mode<synchronous>, transform_indices = @transform_3, window_bounds = array<i64: 128, 32>}, {pipeline_mode = #tpu.pipeline_mode<synchronous>, transform_indices = @transform_4, window_bounds = array<i64: 128, 1>}, {pipeline_mode = #tpu.pipeline_mode<synchronous>, transform_indices = @transform_5, window_bounds = array<i64: 2, 128>}, {pipeline_mode = #tpu.pipeline_mode<synchronous>, transform_indices = @transform_6, window_bounds = array<i64: 2, 1>}, {transform_indices = @transform_7, window_bounds = array<i64: 2, 128>}]} {
    %c0 = arith.constant 0 : index
    %c0_0 = arith.constant 0 : index
    %0 = vector.load %arg1[%c0, %c0_0] : memref<4x128xf32, #tpu.memory_space<vmem>>, vector<4x128xf32>
    %c0_1 = arith.constant 0 : index
    %c0_2 = arith.constant 0 : index
    %1 = vector.load %arg2[%c0_1, %c0_2] : memref<32x4xf32, #tpu.memory_space<vmem>>, vector<32x4xf32>
    %2 = vector.extract_strided_slice %1 {offsets = [0, 0], sizes = [32, 1], strides = [1, 1]} : vector<32x4xf32> to vector<32x1xf32>
    %3 = vector.extract_strided_slice %0 {offsets = [0, 0], sizes = [1, 128], strides = [1, 1]} : vector<4x128xf32> to vector<1x128xf32>
    %4 = vector.broadcast %2 : vector<32x1xf32> to vector<32x128xf32>
    %5 = vector.broadcast %3 : vector<1x128xf32> to vector<32x128xf32>
    %6 = arith.mulf %4, %5 : vector<32x128xf32>
    %7 = vector.extract_strided_slice %1 {offsets = [0, 1], sizes = [32, 1], strides = [1, 1]} : vector<32x4xf32> to vector<32x1xf32>
    %8 = vector.extract_strided_slice %0 {offsets = [1, 0], sizes = [1, 128], strides = [1, 1]} : vector<4x128xf32> to vector<1x128xf32>
    %9 = vector.broadcast %7 : vector<32x1xf32> to vector<32x128xf32>
    %10 = vector.broadcast %8 : vector<1x128xf32> to vector<32x128xf32>
    %11 = arith.mulf %9, %10 : vector<32x128xf32>
    %12 = arith.addf %6, %11 : vector<32x128xf32>
    %13 = vector.extract_strided_slice %1 {offsets = [0, 2], sizes = [32, 1], strides = [1, 1]} : vector<32x4xf32> to vector<32x1xf32>
    %14 = vector.extract_strided_slice %0 {offsets = [2, 0], sizes = [1, 128], strides = [1, 1]} : vector<4x128xf32> to vector<1x128xf32>
    %15 = vector.broadcast %13 : vector<32x1xf32> to vector<32x128xf32>
    %16 = vector.broadcast %14 : vector<1x128xf32> to vector<32x128xf32>
    %17 = arith.mulf %15, %16 : vector<32x128xf32>
    %18 = arith.addf %12, %17 : vector<32x128xf32>
    %19 = vector.extract_strided_slice %1 {offsets = [0, 3], sizes = [32, 1], strides = [1, 1]} : vector<32x4xf32> to vector<32x1xf32>
    %20 = vector.extract_strided_slice %0 {offsets = [3, 0], sizes = [1, 128], strides = [1, 1]} : vector<4x128xf32> to vector<1x128xf32>
    %21 = vector.broadcast %19 : vector<32x1xf32> to vector<32x128xf32>
    %22 = vector.broadcast %20 : vector<1x128xf32> to vector<32x128xf32>
    %23 = arith.mulf %21, %22 : vector<32x128xf32>
    %24 = arith.addf %18, %23 : vector<32x128xf32>
    %c0_3 = arith.constant 0 : index
    %c0_4 = arith.constant 0 : index
    %25 = vector.load %arg3[%c0_3, %c0_4] : memref<32x1xf32, #tpu.memory_space<vmem>>, vector<32x1xf32>
    %26 = vector.broadcast %25 : vector<32x1xf32> to vector<32x128xf32>
    %27 = arith.addf %24, %26 : vector<32x128xf32>
    %28 = math.tanh %27 : vector<32x128xf32>
    %c0_5 = arith.constant 0 : index
    %c0_6 = arith.constant 0 : index
    %29 = vector.load %arg4[%c0_5, %c0_6] : memref<128x32xbf16, #tpu.memory_space<vmem>>, vector<128x32xbf16>
    %30 = arith.truncf %28 : vector<32x128xf32> to vector<32x128xbf16>
    %cst = arith.constant dense<0.000000e+00> : vector<128x128xf32>
    %31 = tpu.matmul %29, %30, %cst {dimension_numbers = #tpu.dot_dimension_numbers<[1], [0], [0], [1], [0, 0, 1, 1], [], []>} : vector<128x32xbf16>, vector<32x128xbf16>, vector<128x128xf32> -> vector<128x128xf32>
    %c0_7 = arith.constant 0 : index
    %c0_8 = arith.constant 0 : index
    %32 = vector.load %arg5[%c0_7, %c0_8] : memref<128x1xf32, #tpu.memory_space<vmem>>, vector<128x1xf32>
    %33 = vector.broadcast %32 : vector<128x1xf32> to vector<128x128xf32>
    %34 = arith.addf %31, %33 : vector<128x128xf32>
    %35 = math.tanh %34 : vector<128x128xf32>
    %c0_9 = arith.constant 0 : index
    %c0_10 = arith.constant 0 : index
    %36 = vector.load %arg6[%c0_9, %c0_10] : memref<2x128xbf16, #tpu.memory_space<vmem>>, vector<2x128xbf16>
    %37 = arith.truncf %35 : vector<128x128xf32> to vector<128x128xbf16>
    %cst_11 = arith.constant dense<0.000000e+00> : vector<2x128xf32>
    %38 = tpu.matmul %36, %37, %cst_11 {dimension_numbers = #tpu.dot_dimension_numbers<[1], [0], [0], [1], [0, 0, 1, 1], [], []>} : vector<2x128xbf16>, vector<128x128xbf16>, vector<2x128xf32> -> vector<2x128xf32>
    %c0_12 = arith.constant 0 : index
    %c0_13 = arith.constant 0 : index
    %39 = vector.load %arg7[%c0_12, %c0_13] : memref<2x1xf32, #tpu.memory_space<vmem>>, vector<2x1xf32>
    %40 = vector.broadcast %39 : vector<2x1xf32> to vector<2x128xf32>
    %41 = arith.addf %38, %40 : vector<2x128xf32>
    %c0_14 = arith.constant 0 : index
    %c0_15 = arith.constant 0 : index
    %42 = vector.load %arg8[%c0_14, %c0_15] : memref<2x128xf32, #tpu.memory_space<vmem>>, vector<2x128xf32>
    tpu.vector_store %arg8[%c0_14, %c0_15], %41 {strides = array<i32>} : memref<2x128xf32, #tpu.memory_space<vmem>>, vector<2x128xf32>,
    return
  }
  func.func @transform_0(%arg0: i32) -> (i32, i32) {
    %c0_i32 = arith.constant 0 : i32
    %c0_i32_0 = arith.constant 0 : i32
    return %c0_i32, %arg0 : i32, i32
  }
  func.func @transform_1(%arg0: i32) -> (i32, i32) {
    %c0_i32 = arith.constant 0 : i32
    %c0_i32_0 = arith.constant 0 : i32
    %c0_i32_1 = arith.constant 0 : i32
    return %c0_i32, %c0_i32_0 : i32, i32
  }
  func.func @transform_2(%arg0: i32) -> (i32, i32) {
    %c0_i32 = arith.constant 0 : i32
    %c0_i32_0 = arith.constant 0 : i32
    %c0_i32_1 = arith.constant 0 : i32
    return %c0_i32, %c0_i32_0 : i32, i32
  }
  func.func @transform_3(%arg0: i32) -> (i32, i32) {
    %c0_i32 = arith.constant 0 : i32
    %c0_i32_0 = arith.constant 0 : i32
    %c0_i32_1 = arith.constant 0 : i32
    return %c0_i32, %c0_i32_0 : i32, i32
  }
  func.func @transform_4(%arg0: i32) -> (i32, i32) {
    %c0_i32 = arith.constant 0 : i32
    %c0_i32_0 = arith.constant 0 : i32
    %c0_i32_1 = arith.constant 0 : i32
    return %c0_i32, %c0_i32_0 : i32, i32
  }
  func.func @transform_5(%arg0: i32) -> (i32, i32) {
    %c0_i32 = arith.constant 0 : i32
    %c0_i32_0 = arith.constant 0 : i32
    %c0_i32_1 = arith.constant 0 : i32
    return %c0_i32, %c0_i32_0 : i32, i32
  }
  func.func @transform_6(%arg0: i32) -> (i32, i32) {
    %c0_i32 = arith.constant 0 : i32
    %c0_i32_0 = arith.constant 0 : i32
    %c0_i32_1 = arith.constant 0 : i32
    return %c0_i32, %c0_i32_0 : i32, i32
  }
  func.func @transform_7(%arg0: i32) -> (i32, i32) {
    %c0_i32 = arith.constant 0 : i32
    %c0_i32_0 = arith.constant 0 : i32
    return %c0_i32, %arg0 : i32, i32
  }
}

</mosaic_0001>

<bundles_post_ra>
// kernel: tpu_custom_call.1
= control target key start
LH: loop header
LB: loop body
LE: loop exit
PB: predicated region body
PF: predicated region fallthrough
CT: control target
= control target key end

     0   :  { %v591_v2 = vmov 2   ;;  %v592_v3 = vmov 1   ;;  %s750_s0 = inlined_call_operand.vmem [shape: f32[4,128], index: 0, kind: input, shape index: {}]   ;;  %s751_s1 = inlined_call_operand.vmem [shape: f32[32,4], index: 1, kind: input, shape index: {}]   ;;  %s752_s2 = inlined_call_operand.vmem [shape: f32[32,1], index: 2, kind: input, shape index: {}]   ;;  %s753_s3 = inlined_call_operand.vmem [shape: bf16[128,32], index: 3, kind: input, shape index: {}]   ;;  %s754_s4 = inlined_call_operand.vmem [shape: f32[128,1], index: 4, kind: input, shape index: {}]   ;;  %s755_s5 = inlined_call_operand.vmem [shape: bf16[2,128], index: 5, kind: input, shape index: {}]   ;;  %s756_s6 = inlined_call_operand.vmem [shape: f32[2,1], index: 6, kind: input, shape index: {}]   ;;  %s757_s7 = inlined_call_operand.hbm [shape: f32[2,128], index: 7, kind: output, shape index: {}]  }
   0x1   :  { %v31_v0 = vld [vmem:[%s751_s1 + $0x10] sm:$0xff]  ;;  %v30_v1 = vld [vmem:[%s751_s1 + $0x8] sm:$0xff]  ;;  %512 = vset.pattern.permute.xlu2 %v591_v2  ;;  %515 = vset.pattern.permute.xlu0 %v592_v3 }
   0x2   :  { %12 = vsyncpa [#allocation3], 0  ;;  %511 = vset.pattern.permute.xlu1 %v592_v3  ;;  %92 = vperm.xlu2 %512, %v31_v0   ;;  %v32_v4 = vld [vmem:[%s751_s1 + $0x18] sm:$0xff]  ;;  %v29_v5 = vld [vmem:[%s751_s1] sm:$0xff]  ;;  %v593_v6 = vmov 3   ;;  %v594_v7 = vmov 0  }
   0x3   :  { %67 = vperm.xlu1 %511, %v31_v0   ;;  %63 = vperm.xlu0 %515, %v30_v1   ;;  %v134_v8 = vld [vmem:[%s752_s2 + $0x8] sm:$0xff]  ;;  %v135_v9 = vld [vmem:[%s752_s2 + $0x10] sm:$0xff]  ;;  %v133_v11 = vld [vmem:[%s752_s2] sm:$0xff]  ;;  %vm319_vm0 = vcmask 261120   ;;  %s595_s16 = smov [#allocation2]   ;;  %s445_s20 = sshll.u32 %s757_s7, 4  ;;  %s446_s20 = int_to_ptr.hbm [resolvable:$true] %s445_s20 }
   0x4   :  { %v193_v10 = vld [vmem:[%s754_s4 + $0x50] sm:$0xff]  ;;  %v136_v12 = vld [vmem:[%s752_s2 + $0x18] sm:$0xff]  ;;  %v192_v13 = vld [vmem:[%s754_s4 + $0x48] sm:$0xff]  ;;  %s443_s17 = sshll.u32 %s595_s16, 4  ;;  %s444_s17 = int_to_ptr.vmem [resolvable:$true] %s443_s17 }
   0x5   :  { %v198_v14 = vld [vmem:[%s754_s4 + $0x78] sm:$0xff]  ;;  %v197_v15 = vld [vmem:[%s754_s4 + $0x70] sm:$0xff]  ;;  %v187_v16 = vld [vmem:[%s754_s4 + $0x20] sm:$0xff] }
   0x6   :  { %v196_v17 = vld [vmem:[%s754_s4 + $0x68] sm:$0xff]  ;;  %v195_v18 = vld [vmem:[%s754_s4 + $0x60] sm:$0xff]  ;;  %v186_v19 = vld [vmem:[%s754_s4 + $0x18] sm:$0xff] }
   0x7   :  { %v191_v20 = vld [vmem:[%s754_s4 + $0x40] sm:$0xff]  ;;  %v194_v21 = vld [vmem:[%s754_s4 + $0x58] sm:$0xff]  ;;  %v189_v24 = vld [vmem:[%s754_s4 + $0x30] sm:$0xff] }
   0x8   :  { %v418_v22 = vld [vmem:[%s756_s6] sm:$0x3]  ;;  %v190_v23 = vld [vmem:[%s754_s4 + $0x38] sm:$0xff]  ;;  %v185_v25 = vld [vmem:[%s754_s4 + $0x10] sm:$0xff] }
   0x9   :  { %v188_v26 = vld [vmem:[%s754_s4 + $0x28] sm:$0xff]  ;;  %v183_v28 = vld [vmem:[%s754_s4] sm:$0xff] }
   0xa   :  { %96 = vperm.xlu2 %512, %v32_v4   ;;  %v184_v27 = vld [vmem:[%s754_s4 + $0x8] sm:$0xff]  ;;  %v28_v41 = vld [vmem:[%s750_s0] sm:$0xf] }
   0xb   :  { %71 = vperm.xlu1 %511, %v32_v4   ;;  %520 = vset.pattern.permute.xlu0 %v593_v6  ;;  %v53_v42 = vperm.slane %v28_v41, 0  ;;  %v74_v43 = vperm.slane %v28_v41, 1  ;;  %v99_v48 = vperm.slane %v28_v41, 2  ;;  %v124_v53 = vperm.slane %v28_v41, 3 }
   0xc   :  { %109 = vperm.xlu0 %520, %v29_v5  }
  0x12   :  { %514 = vset.pattern.permute.xlu2 %v592_v3 }
  0x13   :  { %513 = vset.pattern.permute.xlu1 %v594_v7  ;;  %59 = vperm.xlu2 %514, %v29_v5  }
  0x14   :  { %40 = vperm.xlu1 %513, %v30_v1   ;;  %521 = vset.pattern.permute.xlu0 %v594_v7 }
  0x15   :  { %45 = vperm.xlu0 %521, %v31_v0  }
  0x1b   :  { %517 = vset.pattern.permute.xlu2 %v593_v6 }
  0x1c   :  { %516 = vset.pattern.permute.xlu1 %v593_v6  ;;  %121 = vperm.xlu2 %517, %v32_v4  }
  0x1d   :  { %117 = vperm.xlu1 %516, %v31_v0   ;;  %50 = vperm.xlu0 %521, %v32_v4  }
  0x24   :  { %519 = vset.pattern.permute.xlu2 %v591_v2 }
  0x25   :  { %518 = vset.pattern.permute.xlu1 %v591_v2  ;;  %35 = vperm.xlu0 %521, %v29_v5  }
  0x26   :  { %84 = vperm.xlu1 %518, %v29_v5   ;;  %88 = vperm.xlu2 %519, %v30_v1  }
  0x2d   :  { %144 = vperm.xlu0 %521, %v134_v8  }
  0x2e   :  { %522 = vset.pattern.permute.xlu1 %v593_v6  ;;  %523 = vset.pattern.permute.xlu2 %v594_v7 }
  0x2f   :  { %113 = vperm.xlu1 %522, %v30_v1   ;;  %149 = vperm.xlu2 %523, %v135_v9  }
  0x35   :  { %251 = vperm.xlu0 %521, %v193_v10  }
  0x37   :  { %524 = vset.pattern.permute.xlu1 %v594_v7  ;;  %139 = vperm.xlu2 %523, %v133_v11  }
  0x38   :  { %154 = vperm.xlu1 %524, %v136_v12  }
  0x3d   :  { %246 = vperm.xlu0 %521, %v192_v13  }
  0x3f   :  { %276 = vperm.xlu2 %523, %v198_v14  }
  0x40   :  { %271 = vperm.xlu1 %524, %v197_v15  }
  0x45   :  { %221 = vperm.xlu0 %521, %v187_v16  }
  0x47   :  { %266 = vperm.xlu2 %523, %v196_v17  }
  0x48   :  { %261 = vperm.xlu1 %524, %v195_v18  }
  0x4d   :  { %216 = vperm.xlu0 %521, %v186_v19  }
  0x4f   :  { %241 = vperm.xlu2 %523, %v191_v20  }
  0x50   :  { %256 = vperm.xlu1 %524, %v194_v21  }
  0x55   :  { %421 = vperm.xlu0 %521, %v418_v22  }
  0x57   :  { %236 = vperm.xlu2 %523, %v190_v23  }
  0x58   :  { %231 = vperm.xlu1 %524, %v189_v24  }
  0x5c   :  { %v93_v29 = vpop.permute.xlu2 %92 }
  0x5d   :  { %v102_v58 = vmul.f32 %v99_v48, %v93_v29  ;;  %v497_v29 = vld [vmem:[%s753_s3 + $0x18] sm:$0xff] }
  0x5f   :  { %211 = vperm.xlu2 %523, %v185_v25  }
  0x60   :  { %226 = vperm.xlu1 %524, %v188_v26  }
  0x64   :  { %v97_v32 = vpop.permute.xlu2 %96 }
  0x65   :  { %v103_v4 = vmul.f32 %v99_v48, %v97_v32  ;;  %v498_v32 = vld [vmem:[%s753_s3 + $0x20] sm:$0xff] }
  0x67   :  { %206 = vperm.xlu2 %523, %v184_v27  }
  0x68   :  { %201 = vperm.xlu1 %524, %v183_v28   ;;  %v494_v28 = vld [vmem:[%s753_s3] sm:$0xff] }
  0x6d   :  { %v60_v35 = vpop.permute.xlu2 %59 }
  0x6e   :  { %v75_v55 = vmul.f32 %v74_v43, %v60_v35  ;;  %v499_v35 = vld [vmem:[%s753_s3 + $0x28] sm:$0xff] }
  0x75   :  { %v68_v30 = vpop.permute.xlu1 %67  ;;  %v64_v31 = vpop.permute.xlu0 %63 }
  0x76   :  { %v122_v38 = vpop.permute.xlu2 %121  ;;  %v77_v49 = vmul.f32 %v74_v43, %v68_v30  ;;  %v76_v56 = vmul.f32 %v74_v43, %v64_v31  ;;  %v500_v30 = vld [vmem:[%s753_s3 + $0x30] sm:$0xff]  ;;  %v495_v31 = vld [vmem:[%s753_s3 + $0x8] sm:$0xff] }
  0x77   :  { %v128_v7 = vmul.f32 %v124_v53, %v122_v38 }
  0x7d   :  { %v72_v33 = vpop.permute.xlu1 %71 }
  0x7e   :  { %v110_v34 = vpop.permute.xlu0 %109  ;;  %v78_v57 = vmul.f32 %v74_v43, %v72_v33  ;;  %v501_v33 = vld [vmem:[%s753_s3 + $0x38] sm:$0xff] }
  0x7f   :  { %v125_v11 = vmul.f32 %v124_v53, %v110_v34  ;;  %v496_v34 = vld [vmem:[%s753_s3 + $0x10] sm:$0xff] }
  0x80   :  { %v89_v44 = vpop.permute.xlu2 %88 }
  0x81   :  { %v101_v59 = vmul.f32 %v99_v48, %v89_v44 }
  0x86   :  { %v41_v36 = vpop.permute.xlu1 %40 }
  0x87   :  { %v46_v37 = vpop.permute.xlu0 %45  ;;  %v55_v50 = vmul.f32 %v53_v42, %v41_v36 }
  0x88   :  { %v56_v46 = vmul.f32 %v53_v42, %v46_v37 }
  0x89   :  { %v80_v61 = vadd.f32 %v76_v56, %v55_v50  ;;  %v150_v2 = vpop.permute.xlu2 %149 }
  0x8a   :  { %v81_v54 = vadd.f32 %v77_v49, %v56_v46 }
  0x8b   :  { %v105_v9 = vadd.f32 %v101_v59, %v80_v61 }
  0x8c   :  { %v106_v3 = vadd.f32 %v102_v58, %v81_v54 }
  0x8f   :  { %v118_v39 = vpop.permute.xlu1 %117  ;;  %v51_v40 = vpop.permute.xlu0 %50 }
  0x90   :  { %v57_v51 = vmul.f32 %v53_v42, %v51_v40  ;;  %v127_v60 = vmul.f32 %v124_v53, %v118_v39 }
  0x91   :  { %v140_v20 = vpop.permute.xlu2 %139 }
  0x92   :  { %v82_v62 = vadd.f32 %v78_v57, %v57_v51  ;;  %v131_v6 = vadd.f32 %v127_v60, %v106_v3 }
  0x94   :  { %v107_v10 = vadd.f32 %v103_v4, %v82_v62  ;;  %v159_v13 = vadd.f32 %v150_v2, %v131_v6 }
  0x96   :  { %v132_v15 = vadd.f32 %v128_v7, %v107_v10  ;;  %525 = vtanh.f32 %v159_v13 }
  0x97   :  { %v36_v47 = vpop.permute.xlu0 %35 }
  0x98   :  { %v85_v45 = vpop.permute.xlu1 %84  ;;  %v54_v52 = vmul.f32 %v53_v42, %v36_v47 }
  0x99   :  { %v100_v0 = vmul.f32 %v99_v48, %v85_v45  ;;  %v277_v39 = vpop.permute.xlu2 %276 }
  0x9a   :  { %v79_v63 = vadd.f32 %v75_v55, %v54_v52 }
  0x9c   :  { %v104_v8 = vadd.f32 %v100_v0, %v79_v63  ;;  %v526_v22 = vpop.eup %525 }
  0x9e   :  { %v129_v14 = vadd.f32 %v125_v11, %v104_v8 }
  0x9f   :  { %v145_v16 = vpop.permute.xlu0 %144 }
  0xa0   :  { %v157_v21 = vadd.f32 %v140_v20, %v129_v14 }
  0xa1   :  { %v114_v1 = vpop.permute.xlu1 %113  ;;  %v267_v44 = vpop.permute.xlu2 %266 }
  0xa2   :  { %v126_v5 = vmul.f32 %v124_v53, %v114_v1 }
  0xa4   :  { %v130_v12 = vadd.f32 %v126_v5, %v105_v9 }
  0xa6   :  { %v158_v18 = vadd.f32 %v145_v16, %v130_v12 }
  0xa7   :  { %v252_v49 = vpop.permute.xlu0 %251 }
  0xa9   :  { %v242_v53 = vpop.permute.xlu2 %241 }
  0xaa   :  { %v155_v17 = vpop.permute.xlu1 %154 }
  0xab   :  { %v160_v19 = vadd.f32 %v155_v17, %v132_v15 }
  0xad   :  { %527 = vtanh.f32 %v160_v19 }
  0xae   :  { %529 = vtanh.f32 %v158_v18 }
  0xaf   :  { %531 = vtanh.f32 %v157_v21  ;;  %v247_v59 = vpop.permute.xlu0 %246 }
  0xb1   :  { %v237_v1 = vpop.permute.xlu2 %236 }
  0xb2   :  { %v272_v41 = vpop.permute.xlu1 %271 }
  0xb3   :  { %v528_v23 = vpop.eup %527 }
  0xb4   :  { %v182_v24 = vpack.c.bf16 %v528_v23, %v526_v22  ;;  %v530_v25 = vpop.eup %529 }
  0xb5   :  { %v532_v26 = vpop.eup %531 }
  0xb6   :  { %350 = vmatpush.bf16.msra.mxu0 %v182_v24  ;;  %502 = vmatpush.bf16.msra.mxu2 %v182_v24  ;;  %v181_v27 = vpack.c.bf16 %v530_v25, %v532_v26 }
  0xb7   :  { %503 = vmatpush.bf16.msra.mxu3 %v182_v24  ;;  %v222_v10 = vpop.permute.xlu0 %221 }
  0xb9   :  { %v212_v13 = vpop.permute.xlu2 %211 }
  0xba   :  { %351 = vmatpush.bf16.msra.mxu0 %v181_v27  ;;  %504 = vmatpush.bf16.msra.mxu2 %v181_v27  ;;  %v262_v48 = vpop.permute.xlu1 %261 }
  0xbb   :  { %505 = vmatpush.bf16.msra.mxu3 %v181_v27 }
  0xbd   :  { %486 = vmatmul.msk.bf16.vlgmr.msra.gmra.mxu0 %vm319_vm0, %v494_v28  ;;  %489 = vmatmul.msk.bf16.vlgmr.msra.gmra.mxu2 %vm319_vm0, %v497_v29 }
  0xbe   :  { %492 = vmatmul.msk.bf16.vlgmr.msra.gmra.mxu3 %vm319_vm0, %v500_v30 }
  0xbf   :  { %v217_v23 = vpop.permute.xlu0 %216 }
  0xc1   :  { %v207_v29 = vpop.permute.xlu2 %206 }
  0xc2   :  { %v257_v57 = vpop.permute.xlu1 %256 }
  0xca   :  { %v232_v4 = vpop.permute.xlu1 %231 }
  0xcd   :  { %487 = vmatmul.msk.bf16.gmra.mxu0 %vm319_vm0, %v495_v31  ;;  %490 = vmatmul.msk.bf16.gmra.mxu2 %vm319_vm0, %v498_v32 }
  0xce   :  { %493 = vmatmul.msk.bf16.gmra.mxu3 %vm319_vm0, %v501_v33 }
  0xd2   :  { %v227_v17 = vpop.permute.xlu1 %226 }
  0xda   :  { %v202_v32 = vpop.permute.xlu1 %201 }
  0xdd   :  { %488 = vmatmul.msk.bf16.gmra.mxu0 %vm319_vm0, %v496_v34  ;;  %491 = vmatmul.msk.bf16.gmra.mxu2 %vm319_vm0, %v499_v35 }
 0x13a   :  { %v738_v36 = vpop.f32.mrf.mxu0 }
 0x13b   :  { %v354_v35 = vadd.f32 %v738_v36, %v202_v32  ;;  %v422_v36 = vpop.permute.xlu0 %421 }
 0x140   :  { %v368_v37 = vpop.f32.mrf.mxu2 }
 0x141   :  { %v383_v38 = vpop.f32.mrf.mxu3  ;;  %v369_v15 = vadd.f32 %v368_v37, %v232_v4 }
 0x142   :  { %v740_v40 = vpop.f32.mrf.mxu0  ;;  %v384_v58 = vadd.f32 %v383_v38, %v262_v48 }
 0x143   :  { %v356_v31 = vadd.f32 %v740_v40, %v207_v29 }
 0x148   :  { %v370_v42 = vpop.f32.mrf.mxu2 }
 0x149   :  { %v385_v43 = vpop.f32.mrf.mxu3  ;;  %v371_v12 = vadd.f32 %v370_v42, %v237_v1 }
 0x14a   :  { %v358_v45 = vpop.f32.mrf.mxu0  ;;  %v386_v54 = vadd.f32 %v385_v43, %v267_v44 }
 0x14b   :  { %v359_v28 = vadd.f32 %v358_v45, %v212_v13  ;;  %v409_v45 = vld [vmem:[%s755_s5] sm:$0x1] }
 0x150   :  { %v373_v46 = vpop.f32.mrf.mxu2 }
 0x151   :  { %v388_v47 = vpop.f32.mrf.mxu3  ;;  %v374_v11 = vadd.f32 %v373_v46, %v242_v53 }
 0x152   :  { %v389_v50 = vadd.f32 %v388_v47, %v272_v41  ;;  %v360_v55 = vpop.f32.mrf.mxu0 }
 0x153   :  { %v361_v25 = vadd.f32 %v360_v55, %v217_v23 }
 0x154   :  { %533 = vtanh.f32 %v389_v50 }
 0x158   :  { %v375_v51 = vpop.f32.mrf.mxu2 }
 0x159   :  { %v390_v52 = vpop.f32.mrf.mxu3  ;;  %v376_v8 = vadd.f32 %v375_v51, %v247_v59 }
 0x15a   :  { %v391_v56 = vadd.f32 %v390_v52, %v277_v39  ;;  %v534_v61 = vpop.eup %533  ;;  %v363_v2 = vpop.f32.mrf.mxu0 }
 0x15b   :  { %v364_v22 = vadd.f32 %v363_v2, %v222_v10 }
 0x15c   :  { %535 = vtanh.f32 %v391_v56 }
 0x15d   :  { %537 = vtanh.f32 %v386_v54 }
 0x15e   :  { %539 = vtanh.f32 %v384_v58 }
 0x160   :  { %v378_v60 = vpop.f32.mrf.mxu2 }
 0x161   :  { %v379_v5 = vadd.f32 %v378_v60, %v252_v49 }
 0x162   :  { %v536_v62 = vpop.eup %535  ;;  %v365_v14 = vpop.f32.mrf.mxu0 }
 0x163   :  { %v417_v63 = vpack.c.bf16 %v536_v62, %v534_v61  ;;  %v538_v0 = vpop.eup %537  ;;  %541 = vtanh.f32 %v379_v5  ;;  %v366_v19 = vadd.f32 %v365_v14, %v227_v17 }
 0x164   :  { %v540_v3 = vpop.eup %539 }
 0x165   :  { %424 = vmatpush.bf16.msra.mxu1 %v417_v63  ;;  %v416_v6 = vpack.c.bf16 %v538_v0, %v540_v3 }
 0x168   :  { %v380_v7 = vpop.f32.mrf.mxu2 }
 0x169   :  { %v381_v9 = vadd.f32 %v380_v7, %v257_v57  ;;  %425 = vmatpush.bf16.msra.mxu1 %v416_v6  ;;  %v542_v16 = vpop.eup %541 }
 0x16b   :  { %543 = vtanh.f32 %v381_v9 }
 0x16c   :  { %545 = vtanh.f32 %v376_v8 }
 0x16d   :  { %547 = vtanh.f32 %v374_v11 }
 0x16e   :  { %549 = vtanh.f32 %v371_v12 }
 0x16f   :  { %551 = vtanh.f32 %v369_v15 }
 0x170   :  { %553 = vtanh.f32 %v366_v19 }
 0x171   :  { %v544_v18 = vpop.eup %543  ;;  %555 = vtanh.f32 %v364_v22 }
 0x172   :  { %v415_v20 = vpack.c.bf16 %v544_v18, %v542_v16  ;;  %v546_v21 = vpop.eup %545  ;;  %557 = vtanh.f32 %v361_v25 }
 0x173   :  { %v548_v24 = vpop.eup %547  ;;  %559 = vtanh.f32 %v359_v28 }
 0x174   :  { %426 = vmatpush.bf16.msra.mxu1 %v415_v20  ;;  %v414_v26 = vpack.c.bf16 %v546_v21, %v548_v24  ;;  %v550_v27 = vpop.eup %549  ;;  %561 = vtanh.f32 %v356_v31 }
 0x175   :  { %v552_v30 = vpop.eup %551  ;;  %563 = vtanh.f32 %v354_v35 }
 0x176   :  { %v413_v33 = vpack.c.bf16 %v550_v27, %v552_v30  ;;  %v554_v34 = vpop.eup %553 }
 0x177   :  { %v556_v37 = vpop.eup %555 }
 0x178   :  { %427 = vmatpush.bf16.msra.mxu1 %v414_v26  ;;  %v412_v38 = vpack.c.bf16 %v554_v34, %v556_v37  ;;  %v558_v39 = vpop.eup %557 }
 0x179   :  { %v560_v41 = vpop.eup %559 }
 0x17a   :  { %v411_v42 = vpack.c.bf16 %v558_v39, %v560_v41  ;;  %v562_v43 = vpop.eup %561 }
 0x17b   :  { %v564_v44 = vpop.eup %563 }
 0x17c   :  { %428 = vmatpush.bf16.msra.mxu1 %v413_v33  ;;  %v410_v40 = vpack.c.bf16 %v562_v43, %v564_v44 }
 0x180   :  { %429 = vmatpush.bf16.msra.mxu1 %v412_v38 }
 0x184   :  { %430 = vmatpush.bf16.msra.mxu1 %v411_v42 }
 0x188   :  { %431 = vmatpush.bf16.msra.mxu1 %v410_v40 }
 0x18b   :  { %432 = vmatmul.bf16.vlgmr.msra.gmra.mxu1 %v409_v45 }
 0x208   :  { %v433_v46 = vpop.f32.mrf.mxu1 }
 0x209   :  { %v434_v47 = vadd.f32 %v433_v46, %v422_v36 }
 0x20b   :  { %437 = vst [vmem:[#allocation2] sm:$0x3] %v434_v47 }
 0x20c   :  { %448 = dma.vmem_to_hbm [thread:$0]  %s444_s17, 32, %s446_s20, [#allocation3]  }
 0x210   :  { %v435_v48 = vpop.f32.mrf.mxu1 }
 0x211   :  { %589 = dma.done.wait [#allocation3], 32  }
 0x212   :  { %590 = vsyncadd [#allocation3], 4294967264 }
 0x213   :  { %453 = vsyncpa [#allocation3], 1 }

</bundles_post_ra>
